<compile_context>
chip_gen: v5e
topology: v5e:2x2
jax: 0.10.0
libtpu: 0.0.40
codegen_flags: <defaults>
</compile_context>

<pallas_src>
import math

import jax
import jax.numpy as jnp
from jax import lax
from jax.experimental import pallas as pl
from jax.experimental.pallas import tpu as pltpu

_LANE = 128
_SUBLANE = 8


def _round_up(x, m):
    return ((x + m - 1) // m) * m


def _log_softmax_from_diff(d):
    """log_softmax of 2-class logits [l0, l1] given d = l1 - l0.

    Shared-softplus-term form: softplus(d) = m + s, softplus(-d) = m - d + s,
    with m = max(d, 0), s = log1p(exp(-|d|)) -> one exp + one log1p total.
    """
    m = jnp.maximum(d, 0.0)
    s = jnp.log1p(jnp.exp(-jnp.abs(d)))
    return jnp.concatenate([-(m + s), -(m - d + s)], axis=-1)


# ---------------------------------------------------------------------------
# Kernel 1: doc/event path.
#   doc_emb = softmax(q @ ctx^T / sqrt(H)) @ ctx
#   d       = doc_emb . (w1 - w0) + (b1 - b0)      (single diff logit)
# The log-probs are derived from d in the JAX wrapper.
def event_doc_kernel(q_ref, ctx_ref, wdiff_ref, bdiff_ref, d_ref):
    q = q_ref[...]                                   # (1, H) f32
    ctx = ctx_ref[...]                               # (S, H) f32
    inv_sqrt_dk = 1.0 / math.sqrt(q.shape[-1])
    # scores = q @ ctx^T / sqrt(H): contract over H without materializing ctx.T
    scores = lax.dot_general(
        q, ctx, dimension_numbers=(((1,), (1,)), ((), ())),
        preferred_element_type=jnp.float32) * inv_sqrt_dk            # (1, S)
    m = jnp.max(scores, axis=-1, keepdims=True)
    e = jnp.exp(scores - m)
    p = e / jnp.sum(e, axis=-1, keepdims=True)                       # (1, S)
    doc_emb = jnp.dot(p, ctx, preferred_element_type=jnp.float32)    # (1, H)
    # diff logit: row-vector dot product (VPU mul + XLU reduce, no MXU push)
    d = jnp.sum(doc_emb * wdiff_ref[...], axis=-1, keepdims=True) + bdiff_ref[...]
    d_ref[...] = jnp.broadcast_to(d, d_ref.shape)    # lane-dense (1, 128) store


# ---------------------------------------------------------------------------
# Kernel 2: span/field path.  One (TN, H) x (H, 128) matmul computes the diff
# logit for every field at once; per-field slicing + softplus happen in JAX.
def span_field_kernel(x_ref, wdiff_ref, bdiff_ref, d_ref):
    d_ref[...] = (jnp.dot(x_ref[...], wdiff_ref[...],
                          preferred_element_type=jnp.float32)
                  + bdiff_ref[...])                                  # (TN, P)


# ---------------------------------------------------------------------------
def run_event_path(event_query, sent_context_emb, w_diff_row, b_diff):
    vmem = pl.BlockSpec(memory_space=pltpu.MemorySpace.VMEM)
    d = pl.pallas_call(
        event_doc_kernel,
        out_shape=jax.ShapeDtypeStruct((1, _LANE), jnp.float32),
        in_specs=[vmem] * 4,
        out_specs=vmem,
        compiler_params=pltpu.CompilerParams(vmem_limit_bytes=32 * 1024 * 1024),
    )(event_query, sent_context_emb, w_diff_row, b_diff)
    return _log_softmax_from_diff(d[:, :1])                          # (1, 2)


def _choose_row_tile(n):
    if n < 64:
        return _round_up(max(n, 1), _SUBLANE)
    # >=2 grid steps so both v7x TensorCores get work; tiles capped near 512
    # rows and padding capped at <=7 rows per tile.
    num_tiles = max(pl.cdiv(n, 512), 2)
    return _round_up(pl.cdiv(n, num_tiles), _SUBLANE)


def run_span_path_all_fields(batch_span_emb, w_diff, b_diff):
    n, h = batch_span_emb.shape
    P = w_diff.shape[-1]
    tn = _choose_row_tile(n)
    n_pad = _round_up(n, tn)
    x = batch_span_emb
    if n_pad != n:
        x = jnp.pad(x, ((0, n_pad - n), (0, 0)))
    d = pl.pallas_call(
        span_field_kernel,
        out_shape=jax.ShapeDtypeStruct((n_pad, P), jnp.float32),
        grid=(n_pad // tn,),
        in_specs=[
            pl.BlockSpec((tn, h), lambda i: (i, 0)),
            pl.BlockSpec((h, P), lambda i: (0, 0)),
            pl.BlockSpec((1, P), lambda i: (0, 0)),
        ],
        out_specs=pl.BlockSpec((tn, P), lambda i: (i, 0)),
        compiler_params=pltpu.CompilerParams(
            dimension_semantics=("parallel",)),
    )(x, w_diff, b_diff)
    return d[:n]                                     # (n, P) diff logits


# ---------------------------------------------------------------------------
class EventTableJax:
    """JAX/Pallas re-implementation of DEE EventTable's forward pass."""

    def __init__(self, event_type, field_types, hidden_size, key):
        self.event_type = event_type
        self.field_types = field_types
        self.num_fields = len(field_types)
        self.hidden_size = hidden_size
        self.P = _round_up(max(self.num_fields, 1), _LANE)   # lane-padded width

        stdv = 1.0 / math.sqrt(hidden_size)
        keys = jax.random.split(key, 2 + 2 * self.num_fields + 2)

        # event_query: (1, H) ~ U(-stdv, stdv)   (matches reset_parameters)
        self.event_query = jax.random.uniform(
            keys[0], (1, hidden_size), jnp.float32, -stdv, stdv)
        # field_queries (not used in forward, kept for parity)
        self.field_queries = [
            jax.random.uniform(keys[1 + i], (1, hidden_size), jnp.float32, -stdv, stdv)
            for i in range(self.num_fields)
        ]
        # event_cls: Linear(H, 2). Canonical transposed weight (H, 2), bias (1, 2).
        self.w_event_t = jax.random.uniform(
            keys[1 + self.num_fields], (hidden_size, 2), jnp.float32, -stdv, stdv)
        self.b_event = jax.random.uniform(
            keys[2 + self.num_fields], (1, 2), jnp.float32, -stdv, stdv)
        # field_cls_list: per-field Linear(H, 2)
        self.w_fields_t = []
        self.b_fields = []
        for i in range(self.num_fields):
            kw_w, kw_b = jax.random.split(keys[3 + self.num_fields + i])
            self.w_fields_t.append(
                jax.random.uniform(kw_w, (hidden_size, 2), jnp.float32, -stdv, stdv))
            self.b_fields.append(
                jax.random.uniform(kw_b, (1, 2), jnp.float32, -stdv, stdv))

        # --- kernel-side packed parameters: diff logits only (w1-w0, b1-b0) ---
        # Event head: (1, H) weight row + (1, 1) bias; no padded matmul weights.
        self.w_event_diff = (self.w_event_t[:, 1] - self.w_event_t[:, 0]).reshape(
            1, hidden_size)
        self.b_event_diff = self.b_event[:, 1:2] - self.b_event[:, 0:1]   # (1, 1)
        # Field heads: all fields stacked along the lane axis, padded to P=128.
        w_stack = jnp.stack(self.w_fields_t, axis=-1)   # (H, 2, F)
        b_stack = jnp.stack(self.b_fields, axis=-1)     # (1, 2, F)
        pad = self.P - self.num_fields
        self.w_fields_diff = jnp.pad(w_stack[:, 1, :] - w_stack[:, 0, :],
                                     ((0, 0), (0, pad)))                  # (H, P)
        self.b_fields_diff = jnp.pad(b_stack[:, 1, :] - b_stack[:, 0, :],
                                     ((0, 0), (0, pad)))                  # (1, P)

        # cache of the last all-fields diff-logit matrix (identity-keyed, since
        # JAX arrays are immutable) -> one launch even if the caller iterates
        # over field_idx, as DEE does.
        self._span_cache_key = None
        self._span_cache_val = None

    def __call__(self, sent_context_emb=None, batch_span_emb=None, field_idx=None):
        assert (sent_context_emb is None) ^ (batch_span_emb is None)
        if sent_context_emb is not None:
            return run_event_path(self.event_query, sent_context_emb,
                                  self.w_event_diff, self.b_event_diff)
        assert field_idx is not None
        if batch_span_emb.ndim == 1:
            batch_span_emb = batch_span_emb[None, :]
        if self._span_cache_key is not batch_span_emb:
            self._span_cache_val = run_span_path_all_fields(
                batch_span_emb, self.w_fields_diff, self.b_fields_diff)
            self._span_cache_key = batch_span_emb
        d_col = self._span_cache_val[:, field_idx][:, None]   # (n, 1)
        return _log_softmax_from_diff(d_col)                  # (n, 2)


# ---------------------------------------------------------------------------
def _ref_event_path(event_query, ctx, w_t, b):
    d_k = event_query.shape[-1]
    scores = (event_query @ ctx.T) / math.sqrt(d_k)
    p = jax.nn.softmax(scores, axis=-1)
    doc_emb = p @ ctx
    logits = doc_emb @ w_t + b
    return jax.nn.log_softmax(logits, axis=-1)


def _ref_span_path(x, w_t, b):
    logits = x @ w_t + b
    return jax.nn.log_softmax(logits, axis=-1)


if __name__ == "__main__":
    hidden = 32
    num_sents = 8
    num_spans = 4
    field_types = ["FieldA", "FieldB", "FieldC"]

    root = jax.random.PRNGKey(0)
    k_param, k_ctx, k_span = jax.random.split(root, 3)

    table = EventTableJax("EquityFreeze", field_types, hidden, k_param)

    sent_context_emb = jax.random.normal(k_ctx, (num_sents, hidden), jnp.float32)
    batch_span_emb = jax.random.normal(k_span, (num_spans, hidden), jnp.float32)

    # doc/event classification path
    doc_logp = table(sent_context_emb=sent_context_emb)
    doc_logp = jax.block_until_ready(doc_logp)
    doc_ref = _ref_event_path(table.event_query, sent_context_emb,
                              table.w_event_t, table.b_event)
    assert doc_logp.shape == (1, 2)
    assert jnp.allclose(doc_logp, doc_ref, atol=1e-5), "event path mismatch"

    # span/field classification path (field_idx = 1)
    span_logp = table(batch_span_emb=batch_span_emb, field_idx=1)
    span_logp = jax.block_until_ready(span_logp)
    span_ref = _ref_span_path(batch_span_emb, table.w_fields_t[1], table.b_fields[1])
    assert span_logp.shape == (num_spans, 2)
    assert jnp.allclose(span_logp, span_ref, atol=1e-5), "span path mismatch"

    # all remaining fields: exercises every packed classifier and the cache
    # (only the first call for this batch_span_emb object launched the kernel)
    for f in range(len(field_types)):
        lp = jax.block_until_ready(table(batch_span_emb=batch_span_emb, field_idx=f))
        rf = _ref_span_path(batch_span_emb, table.w_fields_t[f], table.b_fields[f])
        assert jnp.allclose(lp, rf, atol=1e-5), f"span path mismatch field {f}"

    # 1-D span input is unsqueezed to (1, H), matching the PyTorch branch
    single_logp = table(batch_span_emb=batch_span_emb[0], field_idx=0)
    single_logp = jax.block_until_ready(single_logp)
    assert single_logp.shape == (1, 2)
    single_ref = _ref_span_path(batch_span_emb[0:1], table.w_fields_t[0],
                                table.b_fields[0])
    assert jnp.allclose(single_logp, single_ref, atol=1e-5), "1-D span mismatch"

    print("KERNEL_OK")
</pallas_src>

<mosaic_0001>
module attributes {stable_mosaic.version = 11 : i64} {
  func.func @event_doc_kernel(%arg0: memref<1x32xf32, #tpu.memory_space<vmem>>, %arg1: memref<8x32xf32, #tpu.memory_space<vmem>>, %arg2: memref<1x32xf32, #tpu.memory_space<vmem>>, %arg3: memref<1x1xf32, #tpu.memory_space<vmem>>, %arg4: memref<1x128xf32, #tpu.memory_space<vmem>>) attributes {dimension_semantics = [], scalar_prefetch = 0 : i64, scratch_operands = 0 : i64, tpu.core_type = #tpu.core_type<tc>} {
    %c0 = arith.constant 0 : index
    %c0_0 = arith.constant 0 : index
    %0 = vector.load %arg0[%c0, %c0_0] : memref<1x32xf32, #tpu.memory_space<vmem>>, vector<1x32xf32>
    %c0_1 = arith.constant 0 : index
    %c0_2 = arith.constant 0 : index
    %1 = vector.load %arg1[%c0_1, %c0_2] : memref<8x32xf32, #tpu.memory_space<vmem>>, vector<8x32xf32>
    %cst = arith.constant dense<0.000000e+00> : vector<1x8xf32>
    %2 = tpu.matmul %0, %1, %cst {dimension_numbers = #tpu.dot_dimension_numbers<[1], [1], [0], [0], [0, 0, 1, 0], [], []>} : vector<1x32xf32>, vector<8x32xf32>, vector<1x8xf32> -> vector<1x8xf32>
    %cst_3 = arith.constant 0.176776692 : f32
    %3 = vector.broadcast %cst_3 : f32 to vector<1x8xf32>
    %4 = arith.mulf %2, %3 : vector<1x8xf32>
    %cst_4 = arith.constant dense<0xFF800000> : vector<1xf32>
    %5 = vector.multi_reduction <maximumf>, %4, %cst_4 [1] : vector<1x8xf32> to vector<1xf32>
    %6 = vector.shape_cast %5 : vector<1xf32> to vector<1x1xf32>
    %7 = vector.broadcast %6 : vector<1x1xf32> to vector<1x8xf32>
    %8 = arith.subf %4, %7 : vector<1x8xf32>
    %9 = math.exp %8 : vector<1x8xf32>
    %cst_5 = arith.constant dense<0.000000e+00> : vector<1xf32>
    %10 = vector.multi_reduction <add>, %9, %cst_5 [1] : vector<1x8xf32> to vector<1xf32>
    %11 = vector.shape_cast %10 : vector<1xf32> to vector<1x1xf32>
    %12 = vector.broadcast %11 : vector<1x1xf32> to vector<1x8xf32>
    %13 = arith.divf %9, %12 : vector<1x8xf32>
    %cst_6 = arith.constant dense<0.000000e+00> : vector<1x32xf32>
    %14 = tpu.matmul %13, %1, %cst_6 {dimension_numbers = #tpu.dot_dimension_numbers<[1], [0], [0], [1], [0, 0, 1, 1], [], []>} : vector<1x8xf32>, vector<8x32xf32>, vector<1x32xf32> -> vector<1x32xf32>
    %c0_7 = arith.constant 0 : index
    %c0_8 = arith.constant 0 : index
    %15 = vector.load %arg2[%c0_7, %c0_8] : memref<1x32xf32, #tpu.memory_space<vmem>>, vector<1x32xf32>
    %16 = arith.mulf %14, %15 : vector<1x32xf32>
    %cst_9 = arith.constant dense<0.000000e+00> : vector<1xf32>
    %17 = vector.multi_reduction <add>, %16, %cst_9 [1] : vector<1x32xf32> to vector<1xf32>
    %18 = vector.shape_cast %17 : vector<1xf32> to vector<1x1xf32>
    %c0_10 = arith.constant 0 : index
    %c0_11 = arith.constant 0 : index
    %19 = vector.load %arg3[%c0_10, %c0_11] : memref<1x1xf32, #tpu.memory_space<vmem>>, vector<1x1xf32>
    %20 = arith.addf %18, %19 : vector<1x1xf32>
    %21 = vector.shape_cast %20 : vector<1x1xf32> to vector<1x1xf32>
    %22 = vector.broadcast %21 : vector<1x1xf32> to vector<1x128xf32>
    %c0_12 = arith.constant 0 : index
    %c0_13 = arith.constant 0 : index
    %23 = vector.load %arg4[%c0_12, %c0_13] : memref<1x128xf32, #tpu.memory_space<vmem>>, vector<1x128xf32>
    tpu.vector_store %arg4[%c0_12, %c0_13], %22 {strides = array<i32>} : memref<1x128xf32, #tpu.memory_space<vmem>>, vector<1x128xf32>,
    return
  }
}

</mosaic_0001>

<bundles_post_ra>
// kernel: tpu_custom_call.1
= control target key start
LH: loop header
LB: loop body
LE: loop exit
PB: predicated region body
PF: predicated region fallthrough
CT: control target
= control target key end

     0   :  { %s251_s0 = inlined_call_operand.vmem [shape: f32[1,32], index: 0, kind: input, shape index: {}]   ;;  %s252_s1 = inlined_call_operand.hbm [shape: f32[8,32], index: 1, kind: input, shape index: {}]   ;;  %s253_s2 = inlined_call_operand.vmem [shape: f32[1,32], index: 2, kind: input, shape index: {}]   ;;  %s254_s3 = inlined_call_operand.<no memory space> [shape: f32[1,1], index: 3, kind: input, shape index: {}]   ;;  %s255_s4 = inlined_call_operand.hbm [shape: f32[1,128], index: 4, kind: output, shape index: {}]  }
   0x1   :  { %v9_v0 = vstv %s254_s3 }
   0x2   :  { %10 = vst [vmem:[#allocation2] sm:$0x1] %v9_v0 }
   0x3   :  { %11 = vsyncpa [#allocation4], 0 }
   0x4   :  { %12 = vsyncpa [#allocation5], 0  ;;  %s20_s19 = sshll.u32 %s252_s1, 4  ;;  %s208_s20 = smov [#allocation3]   ;;  %s21_s19 = int_to_ptr.hbm [resolvable:$true] %s20_s19 }
   0x5   :  { %s22_s21 = sshll.u32 %s208_s20, 4  ;;  %s23_s21 = int_to_ptr.vmem [resolvable:$true] %s22_s21 }
   0x6   :  { %25 = dma.hbm_to_vmem [thread:$0]  %s21_s19, 128, %s23_s21, [#allocation4]  }
   0x7   :  { %204 = dma.done.wait [#allocation4], 128  }
   0x8   :  { %205 = vsyncadd [#allocation4], 4294967168  ;;  %vm36_vm0 = vcmask 261120   ;;  %v35_v1 = vld [vmem:[#allocation3] sm:$0xff]  ;;  %v34_v2 = vld [vmem:[%s251_s0] sm:$0x1] }
   0x9   :  { %144 = vmatpush.xpose.msk.msra.mxu0 %vm36_vm0, %v35_v1  ;;  %108 = vmatpush.msra.mxu1 %v35_v1  ;;  %vm64_vm1 = vcmask 57344   ;;  %vm89_vm6 = vcmask 64512   ;;  %v113_v23 = vld [vmem:[%s253_s2] sm:$0x1]  ;;  %vm115_vm7 = vcmask 253952   ;;  %v209_v27 = vmov 0  }
   0xa   :  { %150 = vset.pattern.permute.xlu1 %v209_v27  ;;  %151 = vset.pattern.permute.xlu0 %v209_v27  ;;  %v119_v28 = vld [vmem:[#allocation2] sm:$0x1]  ;;  %s210_s3 = smov [#allocation6]   ;;  %s134_s27 = sshll.u32 %s255_s4, 4  ;;  %s135_s27 = int_to_ptr.hbm [resolvable:$true] %s134_s27 }
   0xb   :  { %s132_s24 = sshll.u32 %s210_s3, 4  ;;  %s133_s24 = int_to_ptr.vmem [resolvable:$true] %s132_s24 }
   0xc   :  { %145 = vmatmul.msk.f32.vlgmr.msra.gmra.mxu0 %vm36_vm0, %v34_v2 }
  0x89   :  { %v60_v3 = vpop.f32.mrf.mxu0 }
  0x8a   :  { %v63_v4 = vmul.f32 0.17677669, %v60_v3 }
  0x8c   :  { %v65_v5 = vsel %vm64_vm1, %v63_v4, -inf }
  0x8d   :  { %66 = vmax.xlane.f32.xlu0 %v65_v5 }
 0x100   :  { %v67_v6 = vpop.xlane.xlu0 %66 }
 0x101   :  { %v68_v7 = vsub.f32 %v63_v4, %v67_v6 }
 0x103   :  { %v69_v8 = vmul.f32 1.442695, %v68_v7 }
 0x105   :  { %152 = vpow2.f32 %v69_v8 }
 0x10b   :  { %v153_v9 = vpop.eup %152 }
 0x10c   :  { %v71_v10 = vsel %vm64_vm1, %v153_v9, 0.0 }
 0x10d   :  { %72 = vadd.xlane.f32.xlu0 %v71_v10 }
 0x180   :  { %v73_v11 = vpop.xlane.xlu0 %72 }
 0x181   :  { %154 = vrcp.f32 %v73_v11  ;;  %v85_v15 = vand.u32 2147483648, %v73_v11  ;;  %v83_v17 = vand.u32 2147483647, %v73_v11  ;;  %vm79_vm3 = vweird.f32 %v73_v11 }
 0x183   :  { %v86_v19 = vor.u32 1.1754944e-38, %v85_v15  ;;  %vm84_vm5 = vcmp.eq.f32.partialorder %v83_v17, 8.507059e+37 }
 0x187   :  { %v155_v12 = vpop.eup %154 }
 0x188   :  { %v75_v13 = vmul.f32 %v155_v12, %v73_v11  ;;  %vm80_vm2 = vweird.f32 %v155_v12 }
 0x189   :  { %vm81_vm4 = vmor %vm79_vm3, %vm80_vm2 }
 0x18a   :  { %v76_v14 = vsub.f32 1.0, %v75_v13 }
 0x18c   :  { %v77_v16 = vmul.f32 %v155_v12, %v76_v14 }
 0x18e   :  { %v78_v18 = vadd.f32 %v155_v12, %v77_v16 }
 0x190   :  { %v82_v20 = vsel %vm81_vm4, %v155_v12, %v78_v18 }
 0x191   :  { %v87_v21 = vsel %vm84_vm5, %v86_v19, %v82_v20 }
 0x192   :  { %v88_v22 = vmul.f32 %v153_v9, %v87_v21 }
 0x194   :  { %146 = vmatmul.msk.f32.vlgmr.msra.gmra.mxu1 %vm89_vm6, %v88_v22 }
 0x211   :  { %v110_v24 = vpop.f32.mrf.mxu1 }
 0x212   :  { %v114_v25 = vmul.f32 %v113_v23, %v110_v24 }
 0x214   :  { %v116_v26 = vsel %vm115_vm7, %v114_v25, 0.0 }
 0x215   :  { %117 = vadd.xlane.f32.xlu1 %v116_v26 }
 0x288   :  { %v118_v29 = vpop.xlane.xlu1 %117 }
 0x289   :  { %v120_v30 = vadd.f32 %v119_v28, %v118_v29 }
 0x28b   :  { %123 = vperm.xlu1 %150, %v120_v30  }
 0x2fd   :  { %v124_v31 = vpop.permute.xlu1 %123 }
 0x2fe   :  { %126 = vst [vmem:[#allocation6] sm:$0x1] %v124_v31 }
 0x2ff   :  { %137 = dma.vmem_to_hbm [thread:$0]  %s133_s24, 16, %s135_s27, [#allocation5]  }
 0x300   :  { %206 = dma.done.wait [#allocation5], 16  }
 0x301   :  { %207 = vsyncadd [#allocation5], 4294967280 }
 0x302   :  { %142 = vsyncpa [#allocation4], 1 }
 0x303   :  { %143 = vsyncpa [#allocation5], 1 }

</bundles_post_ra>
